<compile_context>
chip_gen: v6e
topology: v6e:2x2x1
jax: 0.10.0
libtpu: 0.0.40
codegen_flags: <defaults>
</compile_context>

<pallas_src>
import numpy as np
import jax
import jax.numpy as jnp
from jax.experimental import pallas as pl
from jax.experimental.pallas import tpu as pltpu

SUBLANE = 8          # f32 sublane: batch tile must be a multiple of this
_MAX_TILE_B = 8192   # diminishing returns beyond this (per-step overhead amortized)


def _cdiv(a, b):
    return -(-a // b)


def _round_up(x, m):
    return _cdiv(x, m) * m


# --------------------------------------------------------------------------- #
# Kernel
# --------------------------------------------------------------------------- #
def autoencoder_kernel(x_ref,
                       w1_ref, b1_ref,
                       w23_ref, b23_ref,
                       w4_ref, b4_ref,
                       o_ref):
    """Fused forward for one batch tile:
         h1 = relu(x @ W1 + b1)        # [tile_b, 32]
         h2 = relu(h1 @ W23 + b23)     # W23 = W2 @ W3 (exact: no activation between)
         y  = h2 @ W4 + b4             # [tile_b, D]
       bf16 MXU operands (cast in-kernel); bias add / ReLU / accumulation in f32.
    """
    x = x_ref[...].astype(w1_ref.dtype)                     # f32 -> bf16 in-kernel

    h1 = jnp.dot(x, w1_ref[...], preferred_element_type=jnp.float32) + b1_ref[...]
    h1 = jnp.maximum(h1, 0.0)

    h2 = jnp.dot(h1.astype(w23_ref.dtype), w23_ref[...],
                 preferred_element_type=jnp.float32) + b23_ref[...]
    h2 = jnp.maximum(h2, 0.0)

    y = jnp.dot(h2.astype(w4_ref.dtype), w4_ref[...],
                preferred_element_type=jnp.float32) + b4_ref[...]

    o_ref[...] = y.astype(o_ref.dtype)


# --------------------------------------------------------------------------- #
# Wrapper
# --------------------------------------------------------------------------- #
def _vmem_limit_bytes():
    """Generation-aware scoped-VMEM limit: 3/4 of physical, capped at 96 MiB."""
    phys = 64 << 20  # conservative default (v7x per-TC)
    try:
        info = pltpu.get_tpu_info()
        phys = int(getattr(info, "vmem_capacity_bytes", phys)) or phys
    except Exception:
        pass
    return max(32 << 20, min((phys * 3) // 4, 96 << 20))


def _choose_tile_b(B, D, in_itemsize, out_itemsize, vmem_limit, weight_bytes):
    """Largest sublane-aligned batch tile that fits the activation budget,
    with >= 2 grid steps whenever B > 8 so both v7x TensorCores get work."""
    # double-buffered input tile + double-buffered output tile, per row
    per_row = 2 * D * in_itemsize + 2 * D * out_itemsize
    avail = max(vmem_limit - weight_bytes - (4 << 20), per_row * SUBLANE)
    cap = max(SUBLANE, (avail // per_row) // SUBLANE * SUBLANE)
    cap = min(cap, _MAX_TILE_B)
    if B > SUBLANE:
        tile_b = min(cap, _round_up(_cdiv(B, 2), SUBLANE))
    else:
        tile_b = SUBLANE
    return max(SUBLANE, (tile_b // SUBLANE) * SUBLANE)


def autoencoder_forward(x, params, *, tile_b=None,
                        compute_dtype=jnp.bfloat16, out_dtype=None):
    """x: [B, D] float32. params: dict of (w, b) with w stored [in, out], b [1, out]."""
    B, D = x.shape
    f32 = jnp.float32
    out_dtype = x.dtype if out_dtype is None else out_dtype

    w1, b1 = params["w1"].astype(f32), params["b1"].astype(f32)
    w2, b2 = params["w2"].astype(f32), params["b2"].astype(f32)
    w3, b3 = params["w3"].astype(f32), params["b3"].astype(f32)
    w4, b4 = params["w4"].astype(f32), params["b4"].astype(f32)

    # Fold the un-activated middle pair in f32 (exact algebra; tiny rounding diff).
    w23 = w2 @ w3                        # [32, 32]
    b23 = b2 @ w3 + b3                   # [1, 32]

    cd = compute_dtype
    w1_c = w1.astype(cd)                 # [D, 32]   bf16 MXU operand
    w23_c = w23.astype(cd)               # [32, 32]
    w4_c = w4.astype(cd)                 # [32, D]
    # biases stay f32 (added on the f32 accumulator path)

    in_itemsize = np.dtype(x.dtype).itemsize
    out_itemsize = np.dtype(out_dtype).itemsize
    w_itemsize = np.dtype(cd).itemsize
    weight_bytes = 2 * (                 # weights/biases are double-buffered by default
        (w1_c.size + w23_c.size + w4_c.size) * w_itemsize
        + (b1.size + b23.size + b4.size) * 4)

    vmem_limit = _vmem_limit_bytes()
    if tile_b is None:
        tile_b = _choose_tile_b(B, D, in_itemsize, out_itemsize, vmem_limit,
                                int(weight_bytes))
    else:
        tile_b = max(SUBLANE, (int(tile_b) // SUBLANE) * SUBLANE)
    grid = (_cdiv(B, tile_b),)           # partial edge tile is masked by Pallas

    # Full-extent blocks for weights/biases; constant index_map -> resident,
    # never re-DMA'd across batch steps.
    def rep(arr):
        nd = arr.ndim
        return pl.BlockSpec(arr.shape, lambda *_: (0,) * nd)

    # Advisory cost estimate (post-fusion flops, real HBM bytes).
    flops = 2 * B * (D * 32 + 32 * 32 + 32 * D)
    bytes_accessed = int(x.size * in_itemsize + B * D * out_itemsize
                         + weight_bytes // 2)
    cost = pl.CostEstimate(flops=flops, transcendentals=0,
                           bytes_accessed=bytes_accessed)

    out = pl.pallas_call(
        autoencoder_kernel,
        out_shape=jax.ShapeDtypeStruct((B, D), out_dtype),
        grid_spec=pltpu.PrefetchScalarGridSpec(
            num_scalar_prefetch=0,
            grid=grid,
            in_specs=[
                pl.BlockSpec((tile_b, D), lambda i: (i, 0)),   # x streams over batch
                rep(w1_c), rep(b1),
                rep(w23_c), rep(b23),
                rep(w4_c), rep(b4),
            ],
            out_specs=pl.BlockSpec((tile_b, D), lambda i: (i, 0)),
        ),
        compiler_params=pltpu.CompilerParams(
            dimension_semantics=("parallel",),   # batch axis shards across v7x TCs
            vmem_limit_bytes=vmem_limit,
        ),
        cost_estimate=cost,
    )(x, w1_c, b1, w23_c, b23, w4_c, b4)

    return out


# --------------------------------------------------------------------------- #
# Params / reference
# --------------------------------------------------------------------------- #
def init_params(key, input_dim):
    """Mimics torch.nn.Linear default init (U(-1/sqrt(fan_in), +1/sqrt(fan_in))).
    Weights stored [in, out] (transposed vs torch's [out, in]); biases [1, out]."""
    dims = [(input_dim, 32), (32, 16), (16, 32), (32, input_dim)]
    params = {}
    for idx, (fan_in, fan_out) in enumerate(dims, start=1):
        key, kw, kb = jax.random.split(key, 3)
        bound = 1.0 / jnp.sqrt(float(fan_in))
        params[f"w{idx}"] = jax.random.uniform(kw, (fan_in, fan_out), jnp.float32,
                                               -bound, bound)
        params[f"b{idx}"] = jax.random.uniform(kb, (1, fan_out), jnp.float32,
                                               -bound, bound)
    return params


def reference_forward(x, params):
    """Unfused, pure-f32 reference matching the PyTorch module exactly."""
    h = jnp.maximum(x @ params["w1"] + params["b1"], 0.0)
    z = h @ params["w2"] + params["b2"]
    d = jnp.maximum(z @ params["w3"] + params["b3"], 0.0)
    return d @ params["w4"] + params["b4"]


if __name__ == "__main__":
    input_dim = 64
    batch = 8

    key = jax.random.PRNGKey(0)
    key, kx = jax.random.split(key)
    x = jax.random.normal(kx, (batch, input_dim), jnp.float32)
    params = init_params(key, input_dim)

    fwd = jax.jit(autoencoder_forward)
    out = jax.block_until_ready(fwd(x, params))

    ref = reference_forward(x, params)
    assert out.shape == (batch, input_dim)
    assert out.dtype == x.dtype
    # bf16 MXU operands + the W2@W3 fold change rounding order vs the pure-f32
    # reference; values are O(1), bf16 operand error ~1e-2 -> relaxed tolerance.
    assert jnp.allclose(out, ref, atol=5e-2, rtol=5e-2), "mismatch vs pure-JAX reference"

    print("KERNEL_OK")
</pallas_src>

<mosaic_0001>
module attributes {stable_mosaic.version = 11 : i64} {
  func.func @autoencoder_kernel(%arg0: i32, %arg1: memref<8x64xf32, #tpu.memory_space<vmem>>, %arg2: memref<64x32xbf16, #tpu.memory_space<vmem>>, %arg3: memref<1x32xf32, #tpu.memory_space<vmem>>, %arg4: memref<32x32xbf16, #tpu.memory_space<vmem>>, %arg5: memref<1x32xf32, #tpu.memory_space<vmem>>, %arg6: memref<32x64xbf16, #tpu.memory_space<vmem>>, %arg7: memref<1x64xf32, #tpu.memory_space<vmem>>, %arg8: memref<8x64xf32, #tpu.memory_space<vmem>>) attributes {dimension_semantics = [#tpu.dimension_semantics<parallel>], iteration_bounds = array<i64: 1>, scalar_prefetch = 0 : i64, scratch_operands = 0 : i64, tpu.core_type = #tpu.core_type<tc>, window_params = [{transform_indices = @transform_0, window_bounds = array<i64: 8, 64>}, {pipeline_mode = #tpu.pipeline_mode<synchronous>, transform_indices = @transform_1, window_bounds = array<i64: 64, 32>}, {pipeline_mode = #tpu.pipeline_mode<synchronous>, transform_indices = @transform_2, window_bounds = array<i64: 1, 32>}, {pipeline_mode = #tpu.pipeline_mode<synchronous>, transform_indices = @transform_3, window_bounds = array<i64: 32, 32>}, {pipeline_mode = #tpu.pipeline_mode<synchronous>, transform_indices = @transform_4, window_bounds = array<i64: 1, 32>}, {pipeline_mode = #tpu.pipeline_mode<synchronous>, transform_indices = @transform_5, window_bounds = array<i64: 32, 64>}, {pipeline_mode = #tpu.pipeline_mode<synchronous>, transform_indices = @transform_6, window_bounds = array<i64: 1, 64>}, {transform_indices = @transform_7, window_bounds = array<i64: 8, 64>}]} {
    %c0 = arith.constant 0 : index
    %c0_0 = arith.constant 0 : index
    %0 = vector.load %arg1[%c0, %c0_0] : memref<8x64xf32, #tpu.memory_space<vmem>>, vector<8x64xf32>
    %1 = arith.truncf %0 : vector<8x64xf32> to vector<8x64xbf16>
    %c0_1 = arith.constant 0 : index
    %c0_2 = arith.constant 0 : index
    %2 = vector.load %arg2[%c0_1, %c0_2] : memref<64x32xbf16, #tpu.memory_space<vmem>>, vector<64x32xbf16>
    %cst = arith.constant dense<0.000000e+00> : vector<8x32xf32>
    %3 = tpu.matmul %1, %2, %cst {dimension_numbers = #tpu.dot_dimension_numbers<[1], [0], [0], [1], [0, 0, 1, 1], [], []>} : vector<8x64xbf16>, vector<64x32xbf16>, vector<8x32xf32> -> vector<8x32xf32>
    %c0_3 = arith.constant 0 : index
    %c0_4 = arith.constant 0 : index
    %4 = vector.load %arg3[%c0_3, %c0_4] : memref<1x32xf32, #tpu.memory_space<vmem>>, vector<1x32xf32>
    %5 = vector.broadcast %4 : vector<1x32xf32> to vector<8x32xf32>
    %6 = arith.addf %3, %5 : vector<8x32xf32>
    %cst_5 = arith.constant 0.000000e+00 : f32
    %7 = vector.broadcast %cst_5 : f32 to vector<8x32xf32>
    %8 = arith.maximumf %6, %7 : vector<8x32xf32>
    %9 = arith.truncf %8 : vector<8x32xf32> to vector<8x32xbf16>
    %c0_6 = arith.constant 0 : index
    %c0_7 = arith.constant 0 : index
    %10 = vector.load %arg4[%c0_6, %c0_7] : memref<32x32xbf16, #tpu.memory_space<vmem>>, vector<32x32xbf16>
    %cst_8 = arith.constant dense<0.000000e+00> : vector<8x32xf32>
    %11 = tpu.matmul %9, %10, %cst_8 {dimension_numbers = #tpu.dot_dimension_numbers<[1], [0], [0], [1], [0, 0, 1, 1], [], []>} : vector<8x32xbf16>, vector<32x32xbf16>, vector<8x32xf32> -> vector<8x32xf32>
    %c0_9 = arith.constant 0 : index
    %c0_10 = arith.constant 0 : index
    %12 = vector.load %arg5[%c0_9, %c0_10] : memref<1x32xf32, #tpu.memory_space<vmem>>, vector<1x32xf32>
    %13 = vector.broadcast %12 : vector<1x32xf32> to vector<8x32xf32>
    %14 = arith.addf %11, %13 : vector<8x32xf32>
    %cst_11 = arith.constant 0.000000e+00 : f32
    %15 = vector.broadcast %cst_11 : f32 to vector<8x32xf32>
    %16 = arith.maximumf %14, %15 : vector<8x32xf32>
    %17 = arith.truncf %16 : vector<8x32xf32> to vector<8x32xbf16>
    %c0_12 = arith.constant 0 : index
    %c0_13 = arith.constant 0 : index
    %18 = vector.load %arg6[%c0_12, %c0_13] : memref<32x64xbf16, #tpu.memory_space<vmem>>, vector<32x64xbf16>
    %cst_14 = arith.constant dense<0.000000e+00> : vector<8x64xf32>
    %19 = tpu.matmul %17, %18, %cst_14 {dimension_numbers = #tpu.dot_dimension_numbers<[1], [0], [0], [1], [0, 0, 1, 1], [], []>} : vector<8x32xbf16>, vector<32x64xbf16>, vector<8x64xf32> -> vector<8x64xf32>
    %c0_15 = arith.constant 0 : index
    %c0_16 = arith.constant 0 : index
    %20 = vector.load %arg7[%c0_15, %c0_16] : memref<1x64xf32, #tpu.memory_space<vmem>>, vector<1x64xf32>
    %21 = vector.broadcast %20 : vector<1x64xf32> to vector<8x64xf32>
    %22 = arith.addf %19, %21 : vector<8x64xf32>
    %c0_17 = arith.constant 0 : index
    %c0_18 = arith.constant 0 : index
    %23 = vector.load %arg8[%c0_17, %c0_18] : memref<8x64xf32, #tpu.memory_space<vmem>>, vector<8x64xf32>
    tpu.vector_store %arg8[%c0_17, %c0_18], %22 {strides = array<i32>} : memref<8x64xf32, #tpu.memory_space<vmem>>, vector<8x64xf32>,
    return
  }
  func.func @transform_0(%arg0: i32) -> (i32, i32) {
    %c0_i32 = arith.constant 0 : i32
    %c0_i32_0 = arith.constant 0 : i32
    return %arg0, %c0_i32 : i32, i32
  }
  func.func @transform_1(%arg0: i32) -> (i32, i32) {
    %c0_i32 = arith.constant 0 : i32
    %c0_i32_0 = arith.constant 0 : i32
    %c0_i32_1 = arith.constant 0 : i32
    return %c0_i32, %c0_i32_0 : i32, i32
  }
  func.func @transform_2(%arg0: i32) -> (i32, i32) {
    %c0_i32 = arith.constant 0 : i32
    %c0_i32_0 = arith.constant 0 : i32
    %c0_i32_1 = arith.constant 0 : i32
    return %c0_i32, %c0_i32_0 : i32, i32
  }
  func.func @transform_3(%arg0: i32) -> (i32, i32) {
    %c0_i32 = arith.constant 0 : i32
    %c0_i32_0 = arith.constant 0 : i32
    %c0_i32_1 = arith.constant 0 : i32
    return %c0_i32, %c0_i32_0 : i32, i32
  }
  func.func @transform_4(%arg0: i32) -> (i32, i32) {
    %c0_i32 = arith.constant 0 : i32
    %c0_i32_0 = arith.constant 0 : i32
    %c0_i32_1 = arith.constant 0 : i32
    return %c0_i32, %c0_i32_0 : i32, i32
  }
  func.func @transform_5(%arg0: i32) -> (i32, i32) {
    %c0_i32 = arith.constant 0 : i32
    %c0_i32_0 = arith.constant 0 : i32
    %c0_i32_1 = arith.constant 0 : i32
    return %c0_i32, %c0_i32_0 : i32, i32
  }
  func.func @transform_6(%arg0: i32) -> (i32, i32) {
    %c0_i32 = arith.constant 0 : i32
    %c0_i32_0 = arith.constant 0 : i32
    %c0_i32_1 = arith.constant 0 : i32
    return %c0_i32, %c0_i32_0 : i32, i32
  }
  func.func @transform_7(%arg0: i32) -> (i32, i32) {
    %c0_i32 = arith.constant 0 : i32
    %c0_i32_0 = arith.constant 0 : i32
    return %arg0, %c0_i32 : i32, i32
  }
}

</mosaic_0001>

<bundles_post_ra>
// kernel: autoencoder_forward.1
= control target key start
LH: loop header
LB: loop body
LE: loop exit
PB: predicated region body
PF: predicated region fallthrough
CT: control target
= control target key end

     0   :  { %v351_v1 = vmov 0.0   ;;  %vm352_vm0 = vmmov 0   ;;  %s440_s0 = inlined_call_operand.vmem [shape: f32[8,64], index: 0, kind: input, shape index: {}]   ;;  %s441_s1 = inlined_call_operand.vmem [shape: bf16[64,32], index: 1, kind: input, shape index: {}]   ;;  %s442_s2 = inlined_call_operand.vmem [shape: f32[1,32], index: 2, kind: input, shape index: {}]   ;;  %s443_s3 = inlined_call_operand.vmem [shape: bf16[32,32], index: 3, kind: input, shape index: {}]   ;;  %s444_s4 = inlined_call_operand.vmem [shape: f32[1,32], index: 4, kind: input, shape index: {}]   ;;  %s445_s5 = inlined_call_operand.vmem [shape: bf16[32,64], index: 5, kind: input, shape index: {}]   ;;  %s446_s6 = inlined_call_operand.vmem [shape: f32[1,64], index: 6, kind: input, shape index: {}]   ;;  %s447_s7 = inlined_call_operand.hbm [shape: f32[8,64], index: 7, kind: output, shape index: {}]  }
   0x1   :  { %v321_v0 = vld [vmem:[%s441_s1 + $0x18] sm:$0xff]   ;;  %290 = vmatprep.subr.bf16.mxu0 %v351_v1  ;;  %302 = vmatprep.subr.bf16.mxu1 %v351_v1  ;;  %v322_v2 = vld [vmem:[%s441_s1 + $0x10] sm:$0xff]   ;;  %v323_v3 = vld [vmem:[%s441_s1 + $0x8] sm:$0xff]  }
   0x2   :  { %291 = vmatpush3.bf16.msra.mxu0 %v321_v0  ;;  %298 = vmatprep.mubr.msk.bf16.mxu0 %vm352_vm0, %v351_v1 }
   0x3   :  { %292 = vmatprep.subr.bf16.mxu0 %v351_v1  ;;  %306 = vmatprep.mubr.msk.bf16.mxu1 %vm352_vm0, %v351_v1 }
   0x6   :  { %293 = vmatpush3.bf16.msra.mxu0 %v322_v2 }
   0x7   :  { %294 = vmatprep.subr.bf16.mxu0 %v351_v1 }
   0x8   :  { %12 = vsyncpa [#allocation3], 0  ;;  %v324_v4 = vld [vmem:[%s441_s1] sm:$0xff]   ;;  %vm69_vm1 = vcmask 523264   ;;  %v325_v7 = vld [vmem:[%s443_s3 + $0x8] sm:$0xff]   ;;  %vm138_vm2 = vcmask 261120  }
   0x9   :  { %v28_v5 = vld [vmem:[%s440_s0] sm:$0xff]  ;;  %303 = vmatpush3.bf16.msra.mxu1 %v325_v7  ;;  %v327_v15 = vld [vmem:[%s445_s5 + $0x8] sm:$0xff]   ;;  %s353_s21 = smov [#allocation2]  }
   0xa   :  { %295 = vmatpush3.bf16.msra.mxu0 %v323_v3  ;;  %v29_v6 = vpack.c.bf16 %v28_v5, %v28_v5  ;;  %304 = vmatprep.subr.bf16.mxu1 %v351_v1  ;;  %v326_v8 = vld [vmem:[%s443_s3] sm:$0xff]  }
   0xb   :  { %296 = vmatprep.subr.bf16.mxu0 %v351_v1  ;;  %v265_v9 = vld [vmem:[%s442_s2] ss:$0 sm:$0xff] }
   0xc   :  { %v328_v18 = vld [vmem:[%s445_s5] sm:$0xff]   ;;  %s257_s5 = sshll.u32 %s353_s21, 4  ;;  %s258_s5 = int_to_ptr.vmem [resolvable:$true] %s257_s5 }
   0xd   :  { %305 = vmatpush3.bf16.msra.mxu1 %v326_v8  ;;  %v271_v19 = vld [vmem:[%s444_s4] ss:$0 sm:$0xff]  ;;  %s329_s4 = scalar_lea.vmem %s258_s5, 128  ;;  %p334_p1 = scmp.lt.s32.totalorder %s258_s5, %s258_s5 }
   0xe   :  { %297 = vmatpush3.bf16.msra.mxu0 %v324_v4  ;;  %310 = vmatprep.subr.bf16.mxu1 %v351_v1  ;;  %v275_v27 = vld [vmem:[%s446_s6] ss:$0 sm:$0xff]  ;;  %p330_p0 = scmp.ne.s32.totalorder %s258_s5, %s329_s4  ;;  %p335_p2 = scmp.lt.s32.totalorder %s329_s4, %s329_s4 }
  0x10   :  { %p336_p3 = por %p335_p2, %p334_p1 }
  0x11   :  { %299 = vmatmul.mubr.msk.bf16.vlgmr.msra.gmra.mxu0 %vm69_vm1, %v29_v6 }
  0x12   :  { %p337_p4 = pnand %p336_p3, %p330_p0 }
  0xd1   :  { %v107_v10 = vpop.f32.mrf.mxu0 }
  0xd2   :  { %v108_v11 = vadd.f32 %v265_v9, %v107_v10 }
  0xd3   :  { %v300_v12 = vpop.f32.mrf.mxu0 }
  0xd4   :  { %v113_v13 = vmax.f32 %v108_v11, 0.0 }
  0xd5   :  { %v110_v14 = vpop.f32.mrf.mxu0 }
  0xd6   :  { %v114_v16 = vpack.c.bf16 %v113_v13, %v113_v13 }
  0xd7   :  { %v301_v17 = vpop.f32.mrf.mxu0 }
  0xd8   :  { %307 = vmatmul.mubr.msk.bf16.vlgmr.msra.gmra.mxu1 %vm138_vm2, %v114_v16 }
  0xd9   :  { %311 = vmatpush3.bf16.msra.mxu1 %v327_v15  ;;  %314 = vmatprep.mubr.msk.bf16.mxu1 %vm352_vm0, %v351_v1 }
  0xda   :  { %312 = vmatprep.subr.bf16.mxu1 %v351_v1 }
  0xdd   :  { %313 = vmatpush3.bf16.msra.mxu1 %v328_v18 }
 0x198   :  { %v176_v20 = vpop.f32.mrf.mxu1 }
 0x199   :  { %v177_v21 = vadd.f32 %v271_v19, %v176_v20 }
 0x19a   :  { %v308_v22 = vpop.f32.mrf.mxu1 }
 0x19b   :  { %v182_v23 = vmax.f32 %v177_v21, 0.0 }
 0x19c   :  { %v179_v24 = vpop.f32.mrf.mxu1 }
 0x19d   :  { %v183_v25 = vpack.c.bf16 %v182_v23, %v182_v23 }
 0x19e   :  { %v309_v26 = vpop.f32.mrf.mxu1 }
 0x19f   :  { %315 = vmatmul.mubr.msk.bf16.vlgmr.msra.gmra.mxu1 %vm138_vm2, %v183_v25 }
 0x25f   :  { %v244_v28 = vpop.f32.mrf.mxu1 }
 0x260   :  { %v245_v29 = vadd.f32 %v275_v27, %v244_v28 }
 0x261   :  { %v316_v30 = vpop.f32.mrf.mxu1 }
 0x262   :  { %250 = vst.msk [vmem:[#allocation2] sm:$0xff] %vm69_vm1, %v245_v29 }
 0x263   :  { %v247_v31 = vpop.f32.mrf.mxu1 }
 0x264   :  { %340 = shalt.err (!%p337_p4)
}
 0x265   :  { %260 = dma.vmem_to_hbm [thread:$0]  %s258_s5, 128, %s447_s7, [#allocation3]   ;;  %v317_v32 = vpop.f32.mrf.mxu1 }
 0x266   :  { %349 = dma.done.wait [#allocation3], 128  }
 0x267   :  { %350 = vsyncadd [#allocation3], 4294967168 }
 0x268   :  { %264 = vsyncpa [#allocation3], 1 }

</bundles_post_ra>
